<compile_context>
chip_gen: v6e
topology: v6e:2x2x1
jax: 0.10.0
libtpu: 0.0.40
codegen_flags: <defaults>
</compile_context>

<pallas_src>
import jax
import jax.numpy as jnp
from jax.experimental import pallas as pl
from jax.experimental.pallas import tpu as pltpu


def _cdiv(a, b):
    return -(-a // b)


def _round_up(a, b):
    return _cdiv(a, b) * b


def _conv_bn_silu_kernel(x_ref, w_ref, b_ref, o_ref):
    """Fused 1x1-conv (channel matmul) + folded-BN bias + SiLU.

    x_ref: (C1, tp)   activations: channels on sublanes, pixels on lanes
    w_ref: (tc2, C1)  conv weight with BN scale folded in (x dtype or f32)
    b_ref: (tc2, 1)   folded BN bias, f32
    o_ref: (tc2, tp)  output tile (lane-dense)
    """
    acc = jnp.dot(w_ref[...], x_ref[...],
                  preferred_element_type=jnp.float32)         # MXU, f32 acc
    y = acc + b_ref[...]                                       # folded BatchNorm
    # SiLU epilogue in f32 (EUP/VPU slots have slack at the mem-bound point).
    o_ref[...] = (y * jax.nn.sigmoid(y)).astype(o_ref.dtype)


def _choose_tp(p_pix, n, tp_max):
    """Pixel-tile size: full-extent for small maps (no padding, exact block);
    otherwise a multiple of 128 chosen so the total grid has ~>=8 steps
    (keeps both v7x TensorCores busy and the DMA pipeline primed) while
    staying >= 512 lanes (HBM-roofline sweet spot)."""
    if p_pix <= 512:
        return p_pix
    want_tiles = max(1, _cdiv(8, max(n, 1)))
    tp = _round_up(_cdiv(p_pix, want_tiles), 128)
    tp = max(512, min(tp, tp_max))
    return min(tp, _round_up(p_pix, 128))


def conv_bn_silu(x, conv_w, bn_gamma, bn_beta, bn_mean, bn_var,
                 eps=1e-5, tp_max=2048, out_dtype=None):
    """Conv.forward (k=1, s=1, g=1, d=1): SiLU(BN(conv1x1(x))).

    x:       (N, C1, H, W)  NCHW, f32 or bf16 (bf16 recommended: halves traffic)
    conv_w:  (C2, C1, 1, 1)
    bn_*:    (C2,)          eval-mode (running) stats
    returns: (N, C2, H, W)  NCHW, dtype = out_dtype (default: x.dtype)
    """
    n, c1, h, w = x.shape
    c2 = conv_w.shape[0]
    p_pix = h * w
    if out_dtype is None:
        out_dtype = x.dtype

    # --- fold BatchNorm into weight + bias (eval semantics), all in f32 ---
    inv_std = 1.0 / jnp.sqrt(bn_var.astype(jnp.float32) + eps)
    scale = bn_gamma.astype(jnp.float32) * inv_std                       # (C2,)
    w2d = conv_w.reshape(c2, c1).astype(jnp.float32) * scale[:, None]    # (C2,C1)
    bias = (bn_beta.astype(jnp.float32)
            - bn_mean.astype(jnp.float32) * scale).reshape(c2, 1)        # (C2,1)
    # Compute dtype follows the activations: bf16 x -> bf16 weight (MXU fast
    # path); f32 x -> keep the folded weight exact in f32 (tiny either way).
    w_k = w2d if x.dtype == jnp.float32 else w2d.astype(x.dtype)

    # --- channels-first pixel layout: pixels -> lanes; free reshape, no pad,
    #     no dtype-cast pass over x ---
    x3 = x.reshape(n, c1, p_pix)

    tp = _choose_tp(p_pix, n, tp_max)
    tc2 = c2 if c2 <= 512 else 256            # tile C2 only when it is large
    n_pt = _cdiv(p_pix, tp)
    n_ct = _cdiv(c2, tc2)
    # pixel-tile axis outside the c2-tile axis -> the x block index is constant
    # over ci, so x is DMA'd once per pixel tile (weights are tiny).
    grid = (n, n_pt, n_ct)

    # Explicit scoped-VMEM limit derived from the (double-buffered) block sizes:
    # keeps v5e (16 MiB default) from rejecting large-channel layers and stays
    # inside v7x's 64 MiB (shared by 2 TCs).
    x_b = jnp.dtype(x.dtype).itemsize
    w_b = jnp.dtype(w_k.dtype).itemsize
    o_b = jnp.dtype(out_dtype).itemsize
    block_bytes = (c1 * tp * x_b) + (tc2 * c1 * w_b) + (tc2 * 4) + (tc2 * tp * o_b)
    vmem_limit = int(min(100 * 1024 * 1024,
                         max(16 * 1024 * 1024, 3 * block_bytes)))

    cost = pl.CostEstimate(
        flops=2 * n * p_pix * c1 * c2 + 2 * n * p_pix * c2,
        transcendentals=n * p_pix * c2,
        bytes_accessed=(n * c1 * p_pix * x_b + c2 * c1 * w_b + c2 * 4
                        + n * c2 * p_pix * o_b),
    )

    out = pl.pallas_call(
        _conv_bn_silu_kernel,
        out_shape=jax.ShapeDtypeStruct((n, c2, p_pix), out_dtype),
        grid=grid,
        in_specs=[
            # x: one image's (C1, tp) pixel tile; batch axis squeezed out.
            pl.BlockSpec((None, c1, tp), lambda b, pi, ci: (b, 0, pi)),
            # folded weight (resident / tiny): (tc2, C1) block
            pl.BlockSpec((tc2, c1), lambda b, pi, ci: (ci, 0)),
            # folded BN bias
            pl.BlockSpec((tc2, 1), lambda b, pi, ci: (ci, 0)),
        ],
        out_specs=pl.BlockSpec((None, tc2, tp), lambda b, pi, ci: (b, ci, pi)),
        compiler_params=pltpu.CompilerParams(
            dimension_semantics=("parallel", "parallel", "parallel"),
            vmem_limit_bytes=vmem_limit),
        cost_estimate=cost,
    )(x3, w_k, bias)

    # exact-size output: straight (free) reshape back to NCHW, no slicing pass
    return out.reshape(n, c2, h, w)


if __name__ == "__main__":
    key = jax.random.PRNGKey(0)
    k_x, k_w, k_g, k_b, k_m, k_v = jax.random.split(key, 6)

    # Small shapes consistent with Conv defaults: c1=4 -> c2=8, k=1, s=1.
    N, C1, H, W = 2, 4, 16, 16
    C2 = 8

    x = jax.random.normal(k_x, (N, C1, H, W), dtype=jnp.float32)
    conv_w = jax.random.normal(k_w, (C2, C1, 1, 1), dtype=jnp.float32) * 0.1
    bn_gamma = 1.0 + 0.1 * jax.random.normal(k_g, (C2,), dtype=jnp.float32)
    bn_beta = 0.1 * jax.random.normal(k_b, (C2,), dtype=jnp.float32)
    bn_mean = 0.1 * jax.random.normal(k_m, (C2,), dtype=jnp.float32)
    bn_var = jnp.abs(1.0 + 0.1 * jax.random.normal(k_v, (C2,), dtype=jnp.float32))

    # pure-JAX f32 reference (original module semantics: conv -> eval BN -> SiLU)
    ref = jax.lax.conv_general_dilated(
        x, conv_w, window_strides=(1, 1), padding="VALID",
        dimension_numbers=("NCHW", "OIHW", "NCHW"))
    ref = (ref - bn_mean[None, :, None, None]) / jnp.sqrt(
        bn_var[None, :, None, None] + 1e-5)
    ref = ref * bn_gamma[None, :, None, None] + bn_beta[None, :, None, None]
    ref = ref * jax.nn.sigmoid(ref)

    # 1) exact-semantics path: f32 in -> f32 out (matmul fully in f32)
    out = conv_bn_silu(x, conv_w, bn_gamma, bn_beta, bn_mean, bn_var)
    jax.block_until_ready(out)
    assert out.shape == ref.shape and out.dtype == x.dtype
    assert jnp.allclose(out, ref, atol=1e-3, rtol=1e-3), "f32 mismatch vs reference"

    # 2) memory-optimal path (what a real bf16 network would use): bf16 in/out,
    #    bf16 MXU matmul, f32 accumulation + BN + SiLU inside the kernel.
    out_bf = conv_bn_silu(x.astype(jnp.bfloat16), conv_w, bn_gamma, bn_beta,
                          bn_mean, bn_var, out_dtype=jnp.bfloat16)
    jax.block_until_ready(out_bf)
    assert out_bf.shape == ref.shape and out_bf.dtype == jnp.bfloat16
    assert jnp.allclose(out_bf.astype(jnp.float32), ref, atol=5e-2, rtol=5e-2), \
        "bf16 mismatch vs reference"

    print("KERNEL_OK")
</pallas_src>

<mosaic_0001>
module attributes {stable_mosaic.version = 11 : i64} {
  func.func @_conv_bn_silu_kernel(%arg0: i32, %arg1: i32, %arg2: i32, %arg3: memref<1x4x256xf32, #tpu.memory_space<vmem>>, %arg4: memref<8x4xf32, #tpu.memory_space<vmem>>, %arg5: memref<8x1xf32, #tpu.memory_space<vmem>>, %arg6: memref<1x8x256xf32, #tpu.memory_space<vmem>>) attributes {dimension_semantics = [#tpu.dimension_semantics<parallel>, #tpu.dimension_semantics<parallel>, #tpu.dimension_semantics<parallel>], iteration_bounds = array<i64: 2, 1, 1>, scalar_prefetch = 0 : i64, scratch_operands = 0 : i64, tpu.core_type = #tpu.core_type<tc>, window_params = [{transform_indices = @transform_0, window_bounds = array<i64: 1, 4, 256>}, {transform_indices = @transform_1, window_bounds = array<i64: 8, 4>}, {transform_indices = @transform_2, window_bounds = array<i64: 8, 1>}, {transform_indices = @transform_3, window_bounds = array<i64: 1, 8, 256>}]} {
    %c0 = arith.constant 0 : index
    %c0_0 = arith.constant 0 : index
    %0 = vector.load %arg4[%c0, %c0_0] : memref<8x4xf32, #tpu.memory_space<vmem>>, vector<8x4xf32>
    %c0_1 = arith.constant 0 : index
    %c0_2 = arith.constant 0 : index
    %c0_3 = arith.constant 0 : index
    %1 = vector.load %arg3[%c0_1, %c0_2, %c0_3] : memref<1x4x256xf32, #tpu.memory_space<vmem>>, vector<1x4x256xf32>
    %2 = vector.shape_cast %1 : vector<1x4x256xf32> to vector<4x256xf32>
    %cst = arith.constant dense<0.000000e+00> : vector<8x256xf32>
    %3 = tpu.matmul %0, %2, %cst {dimension_numbers = #tpu.dot_dimension_numbers<[1], [0], [0], [1], [0, 0, 1, 1], [], []>} : vector<8x4xf32>, vector<4x256xf32>, vector<8x256xf32> -> vector<8x256xf32>
    %c0_4 = arith.constant 0 : index
    %c0_5 = arith.constant 0 : index
    %4 = vector.load %arg5[%c0_4, %c0_5] : memref<8x1xf32, #tpu.memory_space<vmem>>, vector<8x1xf32>
    %5 = vector.broadcast %4 : vector<8x1xf32> to vector<8x256xf32>
    %6 = arith.addf %3, %5 : vector<8x256xf32>
    %7 = arith.negf %6 : vector<8x256xf32>
    %8 = math.exp %7 : vector<8x256xf32>
    %cst_6 = arith.constant 1.000000e+00 : f32
    %9 = vector.broadcast %cst_6 : f32 to vector<8x256xf32>
    %10 = arith.addf %9, %8 : vector<8x256xf32>
    %11 = arith.divf %9, %10 : vector<8x256xf32>
    %12 = arith.mulf %6, %11 : vector<8x256xf32>
    %c0_7 = arith.constant 0 : index
    %c0_8 = arith.constant 0 : index
    %c0_9 = arith.constant 0 : index
    %13 = vector.load %arg6[%c0_7, %c0_8, %c0_9] : memref<1x8x256xf32, #tpu.memory_space<vmem>>, vector<1x8x256xf32>
    %14 = vector.shape_cast %13 : vector<1x8x256xf32> to vector<8x256xf32>
    %15 = vector.shape_cast %12 : vector<8x256xf32> to vector<1x8x256xf32>
    tpu.vector_store %arg6[%c0_7, %c0_8, %c0_9], %15 {strides = array<i32>} : memref<1x8x256xf32, #tpu.memory_space<vmem>>, vector<1x8x256xf32>,
    return
  }
  func.func @transform_0(%arg0: i32, %arg1: i32, %arg2: i32) -> (i32, i32, i32) {
    %c0_i32 = arith.constant 0 : i32
    %c0_i32_0 = arith.constant 0 : i32
    return %arg0, %c0_i32, %arg1 : i32, i32, i32
  }
  func.func @transform_1(%arg0: i32, %arg1: i32, %arg2: i32) -> (i32, i32) {
    %c0_i32 = arith.constant 0 : i32
    %c0_i32_0 = arith.constant 0 : i32
    return %arg2, %c0_i32 : i32, i32
  }
  func.func @transform_2(%arg0: i32, %arg1: i32, %arg2: i32) -> (i32, i32) {
    %c0_i32 = arith.constant 0 : i32
    %c0_i32_0 = arith.constant 0 : i32
    return %arg2, %c0_i32 : i32, i32
  }
  func.func @transform_3(%arg0: i32, %arg1: i32, %arg2: i32) -> (i32, i32, i32) {
    %c0_i32 = arith.constant 0 : i32
    return %arg0, %arg2, %arg1 : i32, i32, i32
  }
}

</mosaic_0001>

<bundles_post_ra>
// kernel: tpu_custom_call.1
= control target key start
LH: loop header
LB: loop body
LE: loop exit
PB: predicated region body
PF: predicated region fallthrough
CT: control target
= control target key end

     0   :  { %8 = vsyncpa [#allocation3], 0  ;;  %s774_s0 = inlined_call_operand.vmem [shape: f32[2,4,256], index: 0, kind: input, shape index: {}]   ;;  %s775_s1 = inlined_call_operand.vmem [shape: f32[8,4], index: 1, kind: input, shape index: {}]   ;;  %s776_s2 = inlined_call_operand.vmem [shape: f32[8,1], index: 2, kind: input, shape index: {}]   ;;  %s777_s3 = inlined_call_operand.hbm [shape: f32[2,8,256], index: 3, kind: output, shape index: {}]  }
   0x1   :  { %10 = vsyncpa [#allocation3 + $0x1], 0  ;;  %s669_s12 = smov 0   ;;  %s671_s13 = smov 0  }
   0x2   :  { %s673_s14 = smov 0   ;;  %s675_s15 = smov 0  }
   0x3   :  { %s677_s16 = smov 0   ;;  %s679_s17 = smov 0  }
   0x4 LB: > { %s479_s18 = sadd.s32 4294967295, %s644_s17   ;;  %s480_s19 = sadd.s32 4294967294, %s644_s17   ;;  %s644_s17 = sphi %s679_s17, %s16_s17   ;;  %s640_s16 = sphi %s677_s16, %s784_s16   ;;  %s636_s15 = sphi %s675_s15, %s783_s15   ;;  %s632_s14 = sphi %s673_s14, %s782_s14   ;;  %s628_s13 = sphi %s671_s13, %s781_s13   ;;  %s624_s12 = sphi %s669_s12, %s780_s12  }
   0x5   : > { %s35_s20 = sadd.s32 1, %s640_s16  ;;  %s126_s21 = sadd.s32 1, %s632_s14 }
   0x6   : > { %p37_p0 = scmp.ge.s32.totalorder %s35_s20, 2  ;;  %p136_p1 = scmp.ne.s32.totalorder %s632_s14, %s628_s13 }
   0x7   : > { %p137_p2 = scmp.eq.s32.totalorder %s479_s18, 1  ;;  %p142_p3 = scmp.ne.s32.totalorder %s628_s13, %s624_s12 }
   0x8   : > { %s786_s20 = smov (%p37_p0, %s35_s20), 0  ;;  %p143_p5 = scmp.eq.s32.totalorder %s480_s19, 1 }
   0x9   : > { %p709_p4 = por %p137_p2, %p136_p1  ;;  %s119_s23 = ssub.s32 %s640_s16, %s786_s20 }
   0xa   : > { %p485_p6 = scmp.ge.s32.totalorder %s644_s17, 1  ;;  %p124_p7 = scmp.eq.s32.totalorder %s119_s23, 0 }
   0xb   : > { %p716_p8 = por %p143_p5, %p142_p3  ;;  %p188_p9 = scmp.lt.s32.totalorder %s644_s17, 3 }
   0xc   : > { %s722_s25 = scalar_select %p124_p7, %s632_s14, %s126_s21  }
   0xd   : > { %p189_p10 = pnand %p485_p6, %p188_p9 }
   0xe   : > { %p225_p11 = scmp.lt.s32.totalorder (!%p189_p10), %s636_s15, 1  ;;  %s221_s8 = sand.u32 (!%p189_p10), 1, %s628_s13  }
   0xf   : > { %192 = sbr.rel (%p189_p10) target bundleno = 273 (0x111), region = 32  ;;  %s486_s9 = sshll.u32 (!%p189_p10), %s221_s8, 4 }
  0x10   : > { %s500_s10 = sshll.u32 (!%p189_p10), %s636_s15, 8  ;;  %s223_s11 = scalar_lea.vmem (!%p189_p10), [#allocation2], %s486_s9 }
  0x11   : > { %s368_s18 = sshll.u32 (!%p189_p10), %s223_s11, 4  ;;  %s366_s23 = scalar_lea.hbm (!%p189_p10), %s777_s3, %s500_s10  ;;  %s369_s18 = int_to_ptr.vmem [resolvable:$true] %s368_s18 }
  0x12   : > { %s350_s26 = scalar_lea.sflag (!%p189_p10), [#allocation3], %s221_s8  ;;  %s568_s27 = scalar_lea.vmem (!%p189_p10), %s369_s18, 256 }
  0x13   : > { %p569_p12 = scmp.ne.s32.totalorder (!%p189_p10), %s369_s18, %s568_s27 }
  0x14   : > { %v646_v0 = vmov 0.0   ;;  %v647_v1 = vmov 0   ;;  %v245_v2 = vld [vmem:[%s776_s2] sm:$0xff]  ;;  %s226_s28 = scalar_select %p225_p11, %s636_s15, 1  ;;  %vm257_vm0 = vcmask 1043456   ;;  %vm253_vm1 = vcmask 31744  }
  0x15   : > { %326 = vmatprep.mubr.f32.mxu0 %v646_v0  ;;  %558 = vset.pattern.permute.xlu0 %v647_v1  ;;  %v243_v5 = vld [vmem:[%s775_s1] sm:$0xff]  ;;  %p570_p13 = pnand %p569_p12, %p709_p4 }
  0x16   : > { %248 = vperm.xlu0 %558, %v245_v2   ;;  %s499_s29 = sshll.u32 %s226_s28, 3  ;;  %s648_s28 = smov [#allocation2]  }
  0x17   : > { %s232_s5 = scalar_lea.vmem %s774_s0, %s499_s29  ;;  %p571_p0 = pneg %p570_p13 }
  0x18   : > { %v244_v3 = vld [vmem:[%s232_s5] sm:$0xff]  ;;  %s572_s15 = sshll.u32 %s648_s28, 4  ;;  %s573_s15 = int_to_ptr.vmem [resolvable:$false] %s572_s15 }
  0x19   : > { %v252_v4 = vcombine.high %v244_v3, %v244_v3  ;;  %s574_s29 = scalar_lea.vmem %s573_s15, 512  ;;  %p575_p1 = scmp.lt.s32.totalorder %s369_s18, %s573_s15 }
  0x1a   : > { %p576_p2 = scmp.lt.s32.totalorder %s574_s29, %s568_s27 }
  0x1b   : > { %489 = vmatprep.subr.msk.mxu0 %vm257_vm0, %v252_v4 }
  0x1c   : > { %490 = vmatpush1.msk.msra.mxu0 %vm257_vm0, %v244_v3  ;;  %p577_p3 = por %p576_p2, %p575_p1 }
  0x1d   : > { %491 = vmatmul.mubr.msk.f32.vlgmr.msra.gmra.mxu0 %vm253_vm1, %v243_v5 }
  0x1e   : > { %p578_p5 = pnand %p577_p3, %p571_p0 }
  0x91   : > { %v249_v6 = vpop.permute.xlu0 %248 }
  0xdd   : > { %v328_v7 = vpop.f32.mrf.mxu0 }
  0xde   : > { %v329_v8 = vadd.f32 %v328_v7, %v249_v6 }
  0xdf   : > { %v330_v9 = vpop.f32.mrf.mxu0 }
  0xe0   : > { %v492_v10 = vmul.f32 -1.442695, %v329_v8  ;;  %v331_v11 = vadd.f32 %v330_v9, %v249_v6 }
  0xe2   : > { %560 = vpow2.f32 %v492_v10  ;;  %v493_v12 = vmul.f32 -1.442695, %v331_v11 }
  0xe4   : > { %562 = vpow2.f32 %v493_v12 }
  0xef   : > { %v561_v13 = vpop.eup %560 }
  0xf0   : > { %v339_v14 = vadd.f32 1.0, %v561_v13 }
  0xf1   : > { %v563_v15 = vpop.eup %562 }
  0xf2   : > { %564 = vrcp.f32 %v339_v14  ;;  %v340_v16 = vadd.f32 1.0, %v563_v15 }
  0xf4   : > { %566 = vrcp.f32 %v340_v16 }
  0xff   : > { %v565_v17 = vpop.eup %564 }
 0x100   : > { %v345_v18 = vmul.f32 %v565_v17, %v329_v8 }
 0x101   : > { %v567_v19 = vpop.eup %566 }
 0x102   : > { %347 = vst [vmem:[%s223_s11] sm:$0xff] %v345_v18  ;;  %v346_v20 = vmul.f32 %v567_v19, %v331_v11 }
 0x104   : > { %348 = vst [vmem:[%s223_s11 + $0x8] sm:$0xff] %v346_v20 }
 0x105   : > { %581 = shalt.err (!%p578_p5)
}
 0x106   : > { %s582_s30 = scalar_lea.hbm %s366_s23, 256  ;;  %s586_s6 = scalar_lea.hbm %s777_s3, 512 }
 0x107   : > { %p583_p6 = scmp.ne.s32.totalorder %s366_s23, %s582_s30  ;;  %p587_p10 = scmp.lt.s32.totalorder %s366_s23, %s777_s3 }
 0x108   : > { %p588_p11 = scmp.lt.s32.totalorder %s586_s6, %s582_s30 }
 0x109   : > { %p584_p7 = pnand %p583_p6, %p709_p4 }
 0x10a   : > { %p589_p12 = por %p588_p11, %p587_p10 }
 0x10b   : > { %p585_p9 = pneg %p584_p7 }
 0x10d   : > { %p590_p13 = pnand %p589_p12, %p585_p9 }
 0x10f   : > { %593 = shalt.err (!%p590_p13)
}
 0x110   : > { %501 = dma.vmem_to_hbm [thread:$0]  (%p709_p4), %s369_s18, 256, %s366_s23, %s350_s26  }
 0x111 PF: > { %p507_p0 = scmp.ge.s32.totalorder %s644_s17, 2  ;;  %s380_s9 = sand.u32 1, %s624_s12  }
 0x112   : > { %s381_s10 = scalar_lea.sflag [#allocation3], %s380_s9 }
 0x113   : > { %p504_p1 = pnand %p507_p0, %p716_p8 }
 0x115   : > { %p505_p2 = pneg %p504_p1 }
 0x117   : > { %619 = dma.done.wait (%p505_p2), %s381_s10, 256  }
 0x118   : > { %621 = vsyncadd (%p505_p2), %s381_s10, 4294967040  ;;  %s16_s17 = sadd.s32 1, %s644_s17   ;;  %s780_s12 = smov %s628_s13 }
 0x119   : > { %p13_p3 = scmp.ge.s32.totalorder %s16_s17, 4   ;;  %s781_s13 = smov %s632_s14 }
 0x11a   : > { %s782_s14 = smov %s722_s25  ;;  %s783_s15 = smov %s640_s16 }
 0x11b   : > { %s784_s16 = smov %s786_s20  ;;  %15 = sbr.rel (!%p13_p3) target bundleno = 4 (0x4), region = 73 }
 0x120   :  { %386 = vsyncpa [#allocation3], 1 }
 0x121   :  { %388 = vsyncpa [#allocation3 + $0x1], 1 }

</bundles_post_ra>
